<compile_context>
chip_gen: v7x
topology: tpu7x:2x2x1
jax: 0.10.0
libtpu: 0.0.40
codegen_flags: <defaults>
</compile_context>

<pallas_src>
import jax
import jax.numpy as jnp
from jax.experimental import pallas as pl
from jax.experimental.pallas import tpu as pltpu


def _sap_kernel(x_ref, w1_ref, b1_ref, w2_ref, seg_ref, o_ref):
    # x_ref:   (1, C, Bn*T)  channel-major block, batch*time on the lane axis
    # w1_ref:  (C, C)        first Linear weight (PyTorch layout: out x in)
    # b1_ref:  (C, 1)        first Linear bias as a column
    # w2_ref:  (1, C)        second Linear weight (out_features = 1, no bias)
    # seg_ref: (Bn*T, Bn)    0/1 indicator: seg[j, b] = (j // T == b)
    # o_ref:   (1, C, Bn)    pooled output block, batch on the lane axis
    x = x_ref[0].astype(jnp.float32)                       # (C, Bn*T)
    w1 = w1_ref[...]
    b1 = b1_ref[...]                                       # broadcast once (hoisted)
    w2 = w2_ref[...]
    seg = seg_ref[...]

    # Attention MLP, batched over all Bn rows: one wide MXU matmul + EUP tanh.
    h = jnp.tanh(jnp.dot(w1, x, preferred_element_type=jnp.float32) + b1)   # (C, Bn*T)

    # Scores for the whole block, lane-major.
    s = jnp.dot(w2, h, preferred_element_type=jnp.float32)                  # (1, Bn*T)

    # One softmax pass for all Bn rows.  Subtracting the block-global max is
    # mathematically identical to per-row max (the shift cancels) and is
    # range-safe because |s| <= ||w2||_1 (tanh output lies in [-1, 1]).
    m = jnp.max(s, axis=1, keepdims=True)                                   # (1, 1)
    e = jnp.exp(s - m)                                                      # (1, Bn*T)
    denom = jnp.dot(e, seg, preferred_element_type=jnp.float32)             # (1, Bn)

    # Weighted time pooling on the MXU: (C, Bn*T) @ (Bn*T, Bn) -> (C, Bn).
    pooled = jnp.dot(x * e, seg, preferred_element_type=jnp.float32)        # (C, Bn)

    # EUP reciprocal (free slot) + one Newton step to retain ~f32 accuracy.
    inv = pl.reciprocal(denom, approx=True)
    inv = inv * (2.0 - denom * inv)                                         # (1, Bn)

    o_ref[0] = (pooled * inv).astype(o_ref.dtype)                           # (C, Bn)


def _pick_block_n(N, C, T, itemsize=4):
    """Choose the number of batch rows per grid step.

    Targets a ~2 MiB x-block (large DMAs reach ~85%+ of HBM roofline vs ~30%
    for tiny ones) while (a) capping bn so the (Bn*T, Bn) pooling matrix and
    f32 intermediates stay small next to the MLP matmul and comfortably inside
    v7x's 64 MiB VMEM, and (b) keeping >= 2 grid steps when the batch allows
    it so both v7x TensorCores get work (the grid axis is "parallel").
    """
    row_bytes = max(C * T * itemsize, 1)
    bn = (2 * 1024 * 1024) // row_bytes
    bn = int(max(8, min(256, bn)))
    bn -= bn % 8
    if N >= 16 and 2 * bn > N:
        bn = max(8, ((N + 15) // 16) * 8)        # ~half the batch, multiple of 8
    return max(1, min(bn, max(N, 1)))


def sap_forward(x_nchw, w1, b1, w2, *, block_n=None):
    """x_nchw: (N, C, 1, T). w1: (C, C), b1: (C,), w2: (1, C). Returns (N, C)."""
    N, C, H, T = x_nchw.shape
    assert H == 1, "SAP expects H == 1 (x.squeeze(3) after permute)"

    bn = block_n if block_n is not None else _pick_block_n(N, C, T)
    G = pl.cdiv(N, bn)
    n_pad = G * bn

    # (N, C, 1, T) -> (N, C, T) (free) -> pad batch -> (G, C, Bn*T) blocks.
    # Padded rows are all-zero: their pooled output is exactly 0 and sliced off.
    x_nct = x_nchw.reshape(N, C, T)
    if n_pad != N:
        x_nct = jnp.pad(x_nct, ((0, n_pad - N), (0, 0), (0, 0)))
    x_blocks = (x_nct.reshape(G, bn, C, T)
                .transpose(0, 2, 1, 3)
                .reshape(G, C, bn * T))

    b1_col = b1.reshape(C, 1)        # column: broadcasts over the lane axis
    w2_row = w2.reshape(1, C)        # row: no in-kernel transpose of weights

    # Block-diagonal segment indicator used for the per-row softmax sums and
    # the weighted time pooling; constant across the grid.
    seg = (jnp.arange(bn * T, dtype=jnp.int32)[:, None] // T
           == jnp.arange(bn, dtype=jnp.int32)[None, :]).astype(jnp.float32)

    # NOTE: w1/b1/w2/seg have constant index maps, so Pallas keeps them
    # resident and skips re-DMA across grid steps; single-buffering them
    # (pl.Buffered(1)) only matters for very large C and is left at default.
    out = pl.pallas_call(
        _sap_kernel,
        out_shape=jax.ShapeDtypeStruct((G, C, bn), x_nchw.dtype),
        grid_spec=pltpu.PrefetchScalarGridSpec(
            num_scalar_prefetch=0,
            grid=(G,),
            in_specs=[
                pl.BlockSpec((1, C, bn * T), lambda i: (i, 0, 0)),
                pl.BlockSpec((C, C), lambda i: (0, 0)),
                pl.BlockSpec((C, 1), lambda i: (0, 0)),
                pl.BlockSpec((1, C), lambda i: (0, 0)),
                pl.BlockSpec((bn * T, bn), lambda i: (0, 0)),
            ],
            out_specs=pl.BlockSpec((1, C, bn), lambda i: (i, 0, 0)),
        ),
        compiler_params=pltpu.CompilerParams(
            dimension_semantics=("parallel",),     # batch blocks shard across TCs
            vmem_limit_bytes=48 * 1024 * 1024,     # > 16-32 MiB default, < v7x 64 MiB
        ),
    )(x_blocks, w1, b1_col, w2_row, seg)

    # (G, C, Bn) -> (N, C): tiny wrapper-side transpose of the result.
    out = out.transpose(0, 2, 1).reshape(n_pad, C)[:N]
    # TODO(synk): for very large C*T (a single (C, Bn*T) block approaching the
    # VMEM budget even at bn=8), add a T grid axis marked "arbitrary" with
    # online-softmax (m/l/acc) accumulators instead of one full-T block.
    return out


def sap_reference(x_nchw, w1, b1, w2):
    """Pure-JAX reference mirroring the PyTorch forward exactly."""
    x = jnp.transpose(x_nchw, (0, 3, 1, 2))[..., 0]          # (N, T, C)
    h = jnp.tanh(jnp.einsum("ntc,oc->nto", x, w1) + b1)      # (N, T, C)
    s = jnp.einsum("ntc,oc->nto", h, w2)[..., 0]             # (N, T)
    w = jax.nn.softmax(s, axis=1)[..., None]                 # (N, T, 1)
    return jnp.sum(x * w, axis=1)                            # (N, C)


if __name__ == "__main__":
    N, C, T = 16, 32, 16   # batch, channel_count, time steps (H == 1)

    key = jax.random.PRNGKey(0)
    kx, kw1, kb1, kw2 = jax.random.split(key, 4)

    x = jax.random.normal(kx, (N, C, 1, T), dtype=jnp.float32)
    # deterministic synthetic parameters (shapes follow nn.Linear conventions)
    w1 = jax.random.normal(kw1, (C, C), dtype=jnp.float32) * (1.0 / jnp.sqrt(C))
    b1 = jax.random.normal(kb1, (C,), dtype=jnp.float32) * 0.1
    w2 = jax.random.normal(kw2, (1, C), dtype=jnp.float32) * (1.0 / jnp.sqrt(C))

    out = jax.block_until_ready(sap_forward(x, w1, b1, w2))
    ref = sap_reference(x, w1, b1, w2)

    assert out.shape == (N, C)
    assert jnp.allclose(out, ref, atol=2e-5, rtol=2e-5), (
        f"max abs diff = {jnp.max(jnp.abs(out - ref))}"
    )
    print("KERNEL_OK")
</pallas_src>

<mosaic_0001>
module attributes {stable_mosaic.version = 11 : i64} {
  func.func @_sap_kernel(%arg0: i32, %arg1: memref<1x32x128xf32, #tpu.memory_space<vmem>>, %arg2: memref<32x32xf32, #tpu.memory_space<vmem>>, %arg3: memref<32x1xf32, #tpu.memory_space<vmem>>, %arg4: memref<1x32xf32, #tpu.memory_space<vmem>>, %arg5: memref<128x8xf32, #tpu.memory_space<vmem>>, %arg6: memref<1x32x8xf32, #tpu.memory_space<vmem>>) attributes {dimension_semantics = [#tpu.dimension_semantics<parallel>], iteration_bounds = array<i64: 2>, scalar_prefetch = 0 : i64, scratch_operands = 0 : i64, tpu.core_type = #tpu.core_type<tc>, window_params = [{transform_indices = @transform_0, window_bounds = array<i64: 1, 32, 128>}, {pipeline_mode = #tpu.pipeline_mode<synchronous>, transform_indices = @transform_1, window_bounds = array<i64: 32, 32>}, {pipeline_mode = #tpu.pipeline_mode<synchronous>, transform_indices = @transform_2, window_bounds = array<i64: 32, 1>}, {pipeline_mode = #tpu.pipeline_mode<synchronous>, transform_indices = @transform_3, window_bounds = array<i64: 1, 32>}, {pipeline_mode = #tpu.pipeline_mode<synchronous>, transform_indices = @transform_4, window_bounds = array<i64: 128, 8>}, {transform_indices = @transform_5, window_bounds = array<i64: 1, 32, 8>}]} {
    %c0 = arith.constant 0 : index
    %c0_0 = arith.constant 0 : index
    %c0_1 = arith.constant 0 : index
    %0 = vector.load %arg1[%c0, %c0_0, %c0_1] : memref<1x32x128xf32, #tpu.memory_space<vmem>>, vector<1x32x128xf32>
    %1 = vector.shape_cast %0 : vector<1x32x128xf32> to vector<32x128xf32>
    %c0_2 = arith.constant 0 : index
    %c0_3 = arith.constant 0 : index
    %2 = vector.load %arg2[%c0_2, %c0_3] : memref<32x32xf32, #tpu.memory_space<vmem>>, vector<32x32xf32>
    %c0_4 = arith.constant 0 : index
    %c0_5 = arith.constant 0 : index
    %3 = vector.load %arg3[%c0_4, %c0_5] : memref<32x1xf32, #tpu.memory_space<vmem>>, vector<32x1xf32>
    %c0_6 = arith.constant 0 : index
    %c0_7 = arith.constant 0 : index
    %4 = vector.load %arg4[%c0_6, %c0_7] : memref<1x32xf32, #tpu.memory_space<vmem>>, vector<1x32xf32>
    %c0_8 = arith.constant 0 : index
    %c0_9 = arith.constant 0 : index
    %5 = vector.load %arg5[%c0_8, %c0_9] : memref<128x8xf32, #tpu.memory_space<vmem>>, vector<128x8xf32>
    %cst = arith.constant dense<0.000000e+00> : vector<32x128xf32>
    %6 = tpu.matmul %2, %1, %cst {dimension_numbers = #tpu.dot_dimension_numbers<[1], [0], [0], [1], [0, 0, 1, 1], [], []>} : vector<32x32xf32>, vector<32x128xf32>, vector<32x128xf32> -> vector<32x128xf32>
    %7 = vector.broadcast %3 : vector<32x1xf32> to vector<32x128xf32>
    %8 = arith.addf %6, %7 : vector<32x128xf32>
    %9 = math.tanh %8 : vector<32x128xf32>
    %cst_10 = arith.constant dense<0.000000e+00> : vector<1x128xf32>
    %10 = tpu.matmul %4, %9, %cst_10 {dimension_numbers = #tpu.dot_dimension_numbers<[1], [0], [0], [1], [0, 0, 1, 1], [], []>} : vector<1x32xf32>, vector<32x128xf32>, vector<1x128xf32> -> vector<1x128xf32>
    %cst_11 = arith.constant dense<0xFF800000> : vector<1xf32>
    %11 = vector.multi_reduction <maximumf>, %10, %cst_11 [1] : vector<1x128xf32> to vector<1xf32>
    %12 = vector.shape_cast %11 : vector<1xf32> to vector<1x1xf32>
    %13 = vector.broadcast %12 : vector<1x1xf32> to vector<1x128xf32>
    %14 = arith.subf %10, %13 : vector<1x128xf32>
    %15 = math.exp %14 : vector<1x128xf32>
    %cst_12 = arith.constant dense<0.000000e+00> : vector<1x8xf32>
    %16 = tpu.matmul %15, %5, %cst_12 {dimension_numbers = #tpu.dot_dimension_numbers<[1], [0], [0], [1], [0, 0, 1, 1], [], []>} : vector<1x128xf32>, vector<128x8xf32>, vector<1x8xf32> -> vector<1x8xf32>
    %17 = vector.broadcast %15 : vector<1x128xf32> to vector<32x128xf32>
    %18 = arith.mulf %1, %17 : vector<32x128xf32>
    %cst_13 = arith.constant dense<0.000000e+00> : vector<32x8xf32>
    %19 = tpu.matmul %18, %5, %cst_13 {dimension_numbers = #tpu.dot_dimension_numbers<[1], [0], [0], [1], [0, 0, 1, 1], [], []>} : vector<32x128xf32>, vector<128x8xf32>, vector<32x8xf32> -> vector<32x8xf32>
    %20 = tpu.reciprocal %16 {approx = true} : vector<1x8xf32> -> vector<1x8xf32>
    %21 = arith.mulf %16, %20 : vector<1x8xf32>
    %cst_14 = arith.constant 2.000000e+00 : f32
    %22 = vector.broadcast %cst_14 : f32 to vector<1x8xf32>
    %23 = arith.subf %22, %21 : vector<1x8xf32>
    %24 = arith.mulf %20, %23 : vector<1x8xf32>
    %25 = vector.broadcast %24 : vector<1x8xf32> to vector<32x8xf32>
    %26 = arith.mulf %19, %25 : vector<32x8xf32>
    %c0_15 = arith.constant 0 : index
    %c0_16 = arith.constant 0 : index
    %c0_17 = arith.constant 0 : index
    %27 = vector.load %arg6[%c0_15, %c0_16, %c0_17] : memref<1x32x8xf32, #tpu.memory_space<vmem>>, vector<1x32x8xf32>
    %28 = vector.shape_cast %27 : vector<1x32x8xf32> to vector<32x8xf32>
    %29 = vector.shape_cast %26 : vector<32x8xf32> to vector<1x32x8xf32>
    tpu.vector_store %arg6[%c0_15, %c0_16, %c0_17], %29 {strides = array<i32>} : memref<1x32x8xf32, #tpu.memory_space<vmem>>, vector<1x32x8xf32>,
    return
  }
  func.func @transform_0(%arg0: i32) -> (i32, i32, i32) {
    %c0_i32 = arith.constant 0 : i32
    %c0_i32_0 = arith.constant 0 : i32
    %c0_i32_1 = arith.constant 0 : i32
    return %arg0, %c0_i32, %c0_i32_0 : i32, i32, i32
  }
  func.func @transform_1(%arg0: i32) -> (i32, i32) {
    %c0_i32 = arith.constant 0 : i32
    %c0_i32_0 = arith.constant 0 : i32
    %c0_i32_1 = arith.constant 0 : i32
    return %c0_i32, %c0_i32_0 : i32, i32
  }
  func.func @transform_2(%arg0: i32) -> (i32, i32) {
    %c0_i32 = arith.constant 0 : i32
    %c0_i32_0 = arith.constant 0 : i32
    %c0_i32_1 = arith.constant 0 : i32
    return %c0_i32, %c0_i32_0 : i32, i32
  }
  func.func @transform_3(%arg0: i32) -> (i32, i32) {
    %c0_i32 = arith.constant 0 : i32
    %c0_i32_0 = arith.constant 0 : i32
    %c0_i32_1 = arith.constant 0 : i32
    return %c0_i32, %c0_i32_0 : i32, i32
  }
  func.func @transform_4(%arg0: i32) -> (i32, i32) {
    %c0_i32 = arith.constant 0 : i32
    %c0_i32_0 = arith.constant 0 : i32
    %c0_i32_1 = arith.constant 0 : i32
    return %c0_i32, %c0_i32_0 : i32, i32
  }
  func.func @transform_5(%arg0: i32) -> (i32, i32, i32) {
    %c0_i32 = arith.constant 0 : i32
    %c0_i32_0 = arith.constant 0 : i32
    %c0_i32_1 = arith.constant 0 : i32
    return %arg0, %c0_i32, %c0_i32_0 : i32, i32, i32
  }
}

</mosaic_0001>

<bundles_post_ra>
// kernel: tpu_custom_call.1
= control target key start
LH: loop header
LB: loop body
LE: loop exit
PB: predicated region body
PF: predicated region fallthrough
CT: control target
= control target key end

     0   :  { %s995_s18 = smov 0   ;;  %s1125_s0 = inlined_call_operand.vmem [shape: f32[2,32,128], index: 0, kind: input, shape index: {}]   ;;  %s1126_s1 = inlined_call_operand.vmem [shape: f32[32,32], index: 1, kind: input, shape index: {}]   ;;  %s1127_s2 = inlined_call_operand.vmem [shape: f32[32,1], index: 2, kind: input, shape index: {}]   ;;  %s1128_s3 = inlined_call_operand.vmem [shape: f32[1,32], index: 3, kind: input, shape index: {}]   ;;  %s1129_s4 = inlined_call_operand.vmem [shape: f32[128,8], index: 4, kind: input, shape index: {}]   ;;  %s1130_s5 = inlined_call_operand.vmem [shape: f32[2,32,8], index: 5, kind: output, shape index: {}]  }
   0x1 LB: > { %s691_s19 = sadd.s32 4294967295, %s959_s18   ;;  %p695_p0 = scmp.ge.s32.totalorder %s959_s18, 1  ;;  %s959_s18 = sphi %s995_s18, %s15_s18  }
   0x2   : > { %p187_p1 = scmp.lt.s32.totalorder %s959_s18, 3 }
   0x4   : > { %p188_p2 = pnand %p695_p0, %p187_p1 }
   0x5   : > { %p215_p3 = scmp.lt.s32.totalorder (!%p188_p2), %s691_s19, 1  ;;  %v229_v0 = vld [vmem:[%s1126_s1] sm:$0xff] (!%p188_p2)  ;;  %vm274_vm0 = vcmask (!%p188_p2), 261120   ;;  %v961_v1 = vmov (!%p188_p2), 0   ;;  %v235_v3 = vld [vmem:[%s1127_s2 + $0x10] sm:$0xff] (!%p188_p2)  ;;  %v234_v4 = vld [vmem:[%s1127_s2 + $0x8] sm:$0xff] (!%p188_p2) }
   0x6   : > { %191 = sbr.rel (%p188_p2) target bundleno = 867 (0x363), region = 40  ;;  %767 = vmatprep.mubr.msk.f32.mxu0 (!%p188_p2), %vm274_vm0, %v229_v0  ;;  %939 = vset.pattern.permute.xlu0 (!%p188_p2), %v961_v1  ;;  %v233_v2 = vld [vmem:[%s1127_s2] sm:$0xff] (!%p188_p2)  ;;  %v236_v5 = vld [vmem:[%s1127_s2 + $0x18] sm:$0xff] (!%p188_p2)  ;;  %v230_v12 = vld [vmem:[%s1126_s1 + $0x8] sm:$0xff] (!%p188_p2)  ;;  %v962_v15 = vmov (!%p188_p2), 0.0|0.0   ;;  %vm963_vm1 = vmmov (!%p188_p2), 0  }
   0x7   : > { %256 = vperm.xlu0 (!%p188_p2), %939, %v233_v2   ;;  %940 = vset.pattern.permute.xlu1 (!%p188_p2), %v961_v1  ;;  %v231_v13 = vld [vmem:[%s1126_s1 + $0x10] sm:$0xff] (!%p188_p2)  ;;  %v232_v14 = vld [vmem:[%s1126_s1 + $0x18] sm:$0xff] (!%p188_p2)  ;;  %v964_v16 = vmov (!%p188_p2), 0.0   ;;  %v237_v35 = vld [vmem:[%s1128_s3] sm:$0x1] (!%p188_p2)  ;;  %vm449_vm2 = vcmask (!%p188_p2), 1040384   ;;  %v526_v2 = vlaneseq (!%p188_p2) }
   0x8   : > { %266 = vperm.xlu1 (!%p188_p2), %940, %v235_v3   ;;  %865 = vmatprep.subr.bf16.mxu1 (!%p188_p2), %v962_v15  ;;  %v238_v36 = vld [vmem:[%s1129_s4] sm:$0xff] (!%p188_p2)  ;;  %v239_v37 = vld [vmem:[%s1129_s4 + $0x8] sm:$0xff] (!%p188_p2)  ;;  %v240_v38 = vld [vmem:[%s1129_s4 + $0x10] sm:$0xff] (!%p188_p2)  ;;  %vm631_vm3 = vcmask (!%p188_p2), 64512  }
   0x9   : > { %781 = vmatprep.mubr.msk.f32.mxu1 (!%p188_p2), %vm963_vm1, %v964_v16  ;;  %v872_v39 = vpack.c.bf16 (!%p188_p2), %v239_v37, %v238_v36  ;;  %v241_v40 = vld [vmem:[%s1129_s4 + $0x18] sm:$0xff] (!%p188_p2)  ;;  %v242_v42 = vld [vmem:[%s1129_s4 + $0x20] sm:$0xff] (!%p188_p2)  ;;  %v243_v43 = vld [vmem:[%s1129_s4 + $0x28] sm:$0xff] (!%p188_p2)  ;;  %v527_v3 = vshrl.u32 (!%p188_p2), %v526_v2, 7 }
   0xa   : > { %v875_v41 = vpack.c.bf16 (!%p188_p2), %v241_v40, %v240_v38  ;;  %v878_v44 = vpack.c.bf16 (!%p188_p2), %v243_v43, %v242_v42  ;;  %v244_v45 = vld [vmem:[%s1129_s4 + $0x30] sm:$0xff] (!%p188_p2)  ;;  %v245_v46 = vld [vmem:[%s1129_s4 + $0x38] sm:$0xff] (!%p188_p2)  ;;  %v246_v51 = vld [vmem:[%s1129_s4 + $0x40] sm:$0xff] (!%p188_p2) }
   0xb   : > { %261 = vperm.xlu0 (!%p188_p2), %939, %v234_v4   ;;  %v881_v47 = vpack.c.bf16 (!%p188_p2), %v245_v46, %v244_v45  ;;  %v247_v52 = vld [vmem:[%s1129_s4 + $0x48] sm:$0xff] (!%p188_p2)  ;;  %v248_v54 = vld [vmem:[%s1129_s4 + $0x50] sm:$0xff] (!%p188_p2)  ;;  %v249_v55 = vld [vmem:[%s1129_s4 + $0x58] sm:$0xff] (!%p188_p2)  ;;  %v528_v4 = vsub.s32 (!%p188_p2), 0, %v527_v3 }
   0xc   : > { %271 = vperm.xlu1 (!%p188_p2), %940, %v236_v5   ;;  %v884_v53 = vpack.c.bf16 (!%p188_p2), %v247_v52, %v246_v51  ;;  %v887_v56 = vpack.c.bf16 (!%p188_p2), %v249_v55, %v248_v54  ;;  %v250_v57 = vld [vmem:[%s1129_s4 + $0x60] sm:$0xff] (!%p188_p2)  ;;  %v251_v58 = vld [vmem:[%s1129_s4 + $0x68] sm:$0xff] (!%p188_p2)  ;;  %v252_v60 = vld [vmem:[%s1129_s4 + $0x70] sm:$0xff] (!%p188_p2) }
   0xd   : > { %s1132_s19 = smov (!%p215_p3, %s691_s19), 1  ;;  %v890_v59 = vpack.c.bf16 %v251_v58, %v250_v57  ;;  %v253_v61 = vld [vmem:[%s1129_s4 + $0x78] sm:$0xff] }
   0xe   : > { %s707_s28 = sshll.u32 %s1132_s19, 5  ;;  %v893_v62 = vpack.c.bf16 %v253_v61, %v252_v60 }
   0xf   : > { %s219_s8 = scalar_lea.vmem %s1125_s0, %s707_s28  ;;  %s224_s7 = scalar_lea.vmem %s1130_s5, %s707_s28 }
  0x10   : > { %v1027_v6 = vld [vmem:[%s219_s8] sm:$0xff]  ;;  %v1029_v7 = vld [vmem:[%s219_s8 + $0x8] sm:$0xff]  ;;  %v1031_v8 = vld [vmem:[%s219_s8 + $0x10] sm:$0xff] }
  0x11   : > { %v857_v9 = vpack.c.bf16 %v1029_v7, %v1027_v6  ;;  %v1035_v10 = vld [vmem:[%s219_s8 + $0x18] sm:$0xff] }
  0x12   : > { %v861_v11 = vpack.c.bf16 %v1035_v10, %v1031_v8 }
  0x13   : > { %858 = vmatprep.subr.bf16.mxu0 %v857_v9 }
  0x14   : > { %860 = vmatpush3.bf16.msra.mxu0 %v857_v9 }
  0x15   : > { %862 = vmatprep.subr.bf16.mxu0 %v861_v11 }
  0x18   : > { %864 = vmatpush3.bf16.msra.mxu0 %v861_v11 }
  0x19   : > { %871 = vmatprep.subr.bf16.mxu0 %v962_v15 }
  0x1b   : > { %768 = vmatmul.mubr.msk.f32.vlgmr.msra.gmra.mrb[0].mxu0 %vm274_vm0, %v230_v12 }
  0x1c   : > { %770 = vmatprep.mubr.msk.f32.mxu0 %vm274_vm0, %v231_v13  ;;  %873 = vmatpush3.bf16.msra.mxu0 %v872_v39 }
  0x1d   : > { %874 = vmatprep.subr.bf16.mxu0 %v962_v15 }
  0x1f   : > { %771 = vmatmul.mubr.msk.f32.gmra.mrb[2].mxu0 %vm274_vm0, %v232_v14 }
  0x20   : > { %816 = vmatprep.mubr.msk.f32.mxu0 %vm963_vm1, %v964_v16  ;;  %876 = vmatpush3.bf16.msra.mxu0 %v875_v41 }
  0x21   : > { %877 = vmatprep.subr.bf16.mxu0 %v962_v15 }
  0x24   : > { %879 = vmatpush3.bf16.msra.mxu0 %v878_v44 }
  0x25   : > { %880 = vmatprep.subr.bf16.mxu0 %v962_v15 }
  0x28   : > { %882 = vmatpush3.bf16.msra.mxu0 %v881_v47 }
  0x29   : > { %883 = vmatprep.subr.bf16.mxu0 %v962_v15 }
  0x2c   : > { %885 = vmatpush3.bf16.msra.mxu0 %v884_v53 }
  0x2d   : > { %886 = vmatprep.subr.bf16.mxu0 %v962_v15 }
  0x30   : > { %888 = vmatpush3.bf16.msra.mxu0 %v887_v56 }
  0x31   : > { %889 = vmatprep.subr.bf16.mxu0 %v962_v15 }
  0x34   : > { %891 = vmatpush3.bf16.msra.mxu0 %v890_v59 }
  0x35   : > { %892 = vmatprep.subr.bf16.mxu0 %v962_v15 }
  0x38   : > { %894 = vmatpush3.bf16.msra.mxu0 %v893_v62 }
  0x86   : > { %v257_v17 = vpop.permute.xlu0 %256 }
  0x87   : > { %v267_v18 = vpop.permute.xlu1 %266 }
  0x8a   : > { %v262_v19 = vpop.permute.xlu0 %261 }
  0x8b   : > { %v272_v24 = vpop.permute.xlu1 %271 }
  0xee   : > { %v769_v20 = vpop.f32.mrb[0].mxu0 }
  0xef   : > { %v359_v21 = vadd.f32 %v769_v20, %v262_v19  ;;  %v353_v22 = vpop.f32.mrb[1].mxu0 }
  0xf0   : > { %v354_v23 = vadd.f32 %v353_v22, %v257_v17 }
  0xf1   : > { %941 = vtanh.f32 %v359_v21 }
  0xf2   : > { %943 = vtanh.f32 %v354_v23  ;;  %v772_v25 = vpop.f32.mrb[2].mxu0 }
  0xf3   : > { %v369_v26 = vadd.f32 %v772_v25, %v272_v24  ;;  %v363_v27 = vpop.f32.mrb[3].mxu0 }
  0xf4   : > { %v364_v28 = vadd.f32 %v363_v27, %v267_v18 }
  0xf5   : > { %945 = vtanh.f32 %v369_v26 }
  0xf6   : > { %947 = vtanh.f32 %v364_v28 }
  0xfb   : > { %v942_v29 = vpop.eup %941 }
  0xfc   : > { %v944_v30 = vpop.eup %943 }
  0xfd   : > { %v866_v31 = vpack.c.bf16 %v942_v29, %v944_v30 }
  0xff   : > { %v946_v32 = vpop.eup %945  ;;  %867 = vmatpush3.bf16.msra.mxu1 %v866_v31 }
 0x100   : > { %v948_v33 = vpop.eup %947  ;;  %868 = vmatprep.subr.bf16.mxu1 %v962_v15 }
 0x101   : > { %v869_v34 = vpack.c.bf16 %v946_v32, %v948_v33 }
 0x103   : > { %870 = vmatpush3.bf16.msra.mxu1 %v869_v34 }
 0x104   : > { %896 = vmatprep.subr.bf16.mxu1 %v872_v39 }
 0x106   : > { %782 = vmatmul.mubr.msk.f32.vlgmr.msra.gmra.mrb[0].mxu1 %vm274_vm0, %v237_v35 }
 0x107   : > { %898 = vmatpush3.bf16.msra.mxu1 %v872_v39 }
 0x108   : > { %900 = vmatprep.subr.bf16.mxu1 %v875_v41 }
 0x10b   : > { %902 = vmatpush3.bf16.msra.mxu1 %v875_v41 }
 0x10c   : > { %904 = vmatprep.subr.bf16.mxu1 %v878_v44 }
 0x10f   : > { %906 = vmatpush3.bf16.msra.mxu1 %v878_v44 }
 0x110   : > { %908 = vmatprep.subr.bf16.mxu1 %v881_v47 }
 0x113   : > { %910 = vmatpush3.bf16.msra.mxu1 %v881_v47 }
 0x114   : > { %912 = vmatprep.subr.bf16.mxu1 %v884_v53 }
 0x117   : > { %914 = vmatpush3.bf16.msra.mxu1 %v884_v53 }
 0x118   : > { %916 = vmatprep.subr.bf16.mxu1 %v887_v56 }
 0x11b   : > { %918 = vmatpush3.bf16.msra.mxu1 %v887_v56 }
 0x11c   : > { %920 = vmatprep.subr.bf16.mxu1 %v890_v59 }
 0x11f   : > { %922 = vmatpush3.bf16.msra.mxu1 %v890_v59 }
 0x120   : > { %924 = vmatprep.subr.bf16.mxu1 %v893_v62 }
 0x123   : > { %926 = vmatpush3.bf16.msra.mxu1 %v893_v62 }
 0x1d9   : > { %v445_v48 = vpop.f32.mrb[0].mxu1 }
 0x1da   : > { %v783_v49 = vpop.f32.mrb[1].mxu1  ;;  %v450_v50 = vsel %vm449_vm2, %v445_v48, -inf }
 0x1db   : > { %451 = vmax.xlane.f32.xlu0 %v450_v50 }
 0x268   : > { %v452_v63 = vpop.xlane.xlu0 %451 }
 0x269   : > { %v453_v0 = vsub.f32 %v445_v48, %v452_v63 }
 0x26b   : > { %v454_v1 = vmul.f32 1.442695, %v453_v0 }
 0x26d   : > { %949 = vpow2.f32 %v454_v1 }
 0x277   : > { %v950_v5 = vpop.eup %949 }
 0x278   : > { %817 = vmatmul.mubr.f32.vlgmr.msra.gmra.mrb[4].mxu0 %v950_v5  ;;  %v529_v9 = vrot.slane %v950_v5, %v528_v4 }
 0x27a   : > { %v530_v11 = vmul.f32 %v529_v9, %v1027_v6  ;;  %v531_v12 = vmul.f32 %v529_v9, %v1029_v7  ;;  %v532_v13 = vmul.f32 %v529_v9, %v1031_v8  ;;  %v533_v14 = vmul.f32 %v529_v9, %v1035_v10 }
 0x27c   : > { %851 = vmatprep.mubr.f32.mxu1 %v530_v11 }
 0x27d   : > { %852 = vmatmul.mubr.f32.vlgmr.msra.gmra.mrb[2].mxu1 %v531_v12 }
 0x27e   : > { %854 = vmatprep.mubr.f32.mxu1 %v532_v13 }
 0x281   : > { %855 = vmatmul.mubr.f32.gmra.mrb[4].mxu1 %v533_v14 }
 0x34b   : > { %v522_v15 = vpop.f32.mrb[4].mxu0 }
 0x34c   : > { %951 = vrcp.f32 %v522_v15  ;;  %v818_v16 = vpop.f32.mrb[5].mxu0 }
 0x350   : > { %v853_v17 = vpop.f32.mrb[2].mxu1 }
 0x351   : > { %v600_v18 = vpop.f32.mrb[3].mxu1 }
 0x354   : > { %v856_v19 = vpop.f32.mrb[4].mxu1 }
 0x355   : > { %v610_v20 = vpop.f32.mrb[5].mxu1 }
 0x356   : > { %v952_v21 = vpop.eup %951 }
 0x357   : > { %v620_v6 = vmul.f32 %v952_v21, %v522_v15 }
 0x359   : > { %v621_v22 = vsub.f32 2.0, %v620_v6 }
 0x35b   : > { %v622_v7 = vmul.f32 %v952_v21, %v621_v22 }
 0x35d   : > { %v626_v23 = vrot.slane %v622_v7, %v528_v4 }
 0x35f   : > { %v628_v8 = vmul.f32 %v853_v17, %v626_v23  ;;  %v627_v10 = vmul.f32 %v626_v23, %v600_v18  ;;  %v630_v24 = vmul.f32 %v856_v19, %v626_v23  ;;  %v629_v25 = vmul.f32 %v626_v23, %v610_v20 }
 0x361   : > { %633 = vst.msk [vmem:[%s224_s7 + $0x8] sm:$0xff] %vm631_vm3, %v628_v8  ;;  %632 = vst.msk [vmem:[%s224_s7] sm:$0xff] %vm631_vm3, %v627_v10 }
 0x362   : > { %635 = vst.msk [vmem:[%s224_s7 + $0x18] sm:$0xff] %vm631_vm3, %v630_v24  ;;  %634 = vst.msk [vmem:[%s224_s7 + $0x10] sm:$0xff] %vm631_vm3, %v629_v25 }
 0x363 PF: > { %s15_s18 = sadd.s32 1, %s959_s18  }
 0x364   : > { %p12_p4 = scmp.ge.s32.totalorder %s15_s18, 4  }
 0x366   :  { %14 = sbr.rel (!%p12_p4) target bundleno = 1 (0x1), region = 70 }

</bundles_post_ra>
